<compile_context>
chip_gen: v7x
topology: tpu7x:2x2x1
jax: 0.10.0
libtpu: 0.0.40
codegen_flags: <defaults>
</compile_context>

<pallas_src>
import functools

import jax
import jax.numpy as jnp
from jax.experimental import pallas as pl
from jax.experimental.pallas import tpu as pltpu


def _round_up(x, m):
    return ((x + m - 1) // m) * m


def _critic_kernel(x_ref, w1_ref, b1_ref, w2_ref, b2_ref, w3_ref, b3_ref, o_ref,
                   *, sub_b, n_sub):
    # Weights/biases are resident across the whole grid (constant index_map);
    # load them once per tile.
    w1 = w1_ref[...]          # (state_dim, hidden)
    b1 = b1_ref[...]          # (1, hidden)
    w2 = w2_ref[...]          # (hidden, hidden)
    b2 = b2_ref[...]          # (1, hidden)
    w3 = w3_ref[...]          # (1, hidden)  -- PyTorch row layout
    b3 = b3_ref[...]          # (1, 1)

    # Statically unrolled sub-tile loop over sub_b-row chunks of the batch tile:
    # keeps the (sub_b, hidden) f32 intermediates' live range small while the
    # outer grid tile stays large enough to amortize per-step overhead.
    for s in range(n_sub):
        lo = s * sub_b
        xs = x_ref[lo:lo + sub_b, :]                                   # (sub_b, state_dim)
        h1 = jnp.maximum(
            jnp.dot(xs, w1, preferred_element_type=jnp.float32) + b1, 0.0)
        h2 = jnp.maximum(
            jnp.dot(h1, w2, preferred_element_type=jnp.float32) + b2, 0.0)
        # Final (hidden -> 1) layer on the VPU/XLU: multiply + lane reduction
        # instead of an N=1 MXU matmul; the result comes out as a lane-dense row.
        row = jnp.sum(h2 * w3, axis=-1)[None, :] + b3                  # (1, sub_b)
        o_ref[:, lo:lo + sub_b] = row.astype(o_ref.dtype)


@functools.partial(jax.jit, static_argnames=("block_b",))
def critic_forward(x, params, *, block_b=1024):
    """x: (B, state_dim) float32. Returns (B, 1) float32."""
    w1, b1, w2, b2, w3, b3 = params
    B, state_dim = x.shape
    hidden = w1.shape[1]

    assert block_b % 128 == 0, "block_b must be a multiple of 128 (lane width)"

    # Effective batch tile: multiple of 128, no larger than the padded batch.
    block_b_eff = min(block_b, _round_up(B, 128))
    B_pad = _round_up(B, block_b_eff)
    if B_pad != B:
        x = jnp.pad(x, ((0, B_pad - B), (0, 0)))   # padded rows are discarded below

    num_tiles = B_pad // block_b_eff
    sub_b = 256 if block_b_eff % 256 == 0 else 128
    n_sub = block_b_eff // sub_b

    kernel = functools.partial(_critic_kernel, sub_b=sub_b, n_sub=n_sub)

    # Advisory cost for XLA scheduling around the custom call.
    flops = 2 * B_pad * (state_dim * hidden + hidden * hidden + hidden)
    bytes_accessed = 4 * (B_pad * state_dim + B_pad
                          + state_dim * hidden + hidden
                          + hidden * hidden + hidden
                          + hidden + 1)
    cost = pl.CostEstimate(flops=int(flops), transcendentals=0,
                           bytes_accessed=int(bytes_accessed))

    # Only set an explicit VMEM budget if the tile is pushed very large
    # (matters on v7x's 64 MiB VMEM / default scoped limit).
    tile_bytes = 4 * block_b_eff * (state_dim + 1)                      # x tile + out tile
    weight_bytes = 4 * (state_dim * hidden + hidden * hidden + 3 * hidden + 1)
    vmem_estimate = 2 * 2 * tile_bytes + 2 * weight_bytes + (4 << 20)   # dbl-buffer + headroom
    compiler_kwargs = dict(dimension_semantics=("parallel",))
    if vmem_estimate > (16 << 20):
        compiler_kwargs["vmem_limit_bytes"] = int(min(vmem_estimate, 60 << 20))

    out_row = pl.pallas_call(
        kernel,
        out_shape=jax.ShapeDtypeStruct((1, B_pad), jnp.float32),
        grid_spec=pltpu.PrefetchScalarGridSpec(
            num_scalar_prefetch=0,
            grid=(num_tiles,),
            in_specs=[
                # batch tile of the input (rows on sublanes, features on lanes)
                pl.BlockSpec((block_b_eff, state_dim), lambda i: (i, 0)),
                # parameters: full blocks, resident for every grid step
                pl.BlockSpec((state_dim, hidden), lambda i: (0, 0)),
                pl.BlockSpec((1, hidden), lambda i: (0, 0)),
                pl.BlockSpec((hidden, hidden), lambda i: (0, 0)),
                pl.BlockSpec((1, hidden), lambda i: (0, 0)),
                pl.BlockSpec((1, hidden), lambda i: (0, 0)),     # w3 row
                pl.BlockSpec((1, 1), lambda i: (0, 0)),          # b3 scalar
            ],
            # Lane-dense output: one (1, block_b) row per tile.
            out_specs=pl.BlockSpec((1, block_b_eff), lambda i: (0, i)),
        ),
        compiler_params=pltpu.CompilerParams(**compiler_kwargs),
        cost_estimate=cost,
    )(x, w1, b1, w2, b2, w3, b3)

    # (1, B_pad) row -> (B, 1) column; drop padded rows.
    return out_row.reshape(B_pad, 1)[:B]


def init_critic_params(key, state_dim, hidden_size=128):
    """Deterministic init matching nn.Linear's U(-1/sqrt(fan_in), 1/sqrt(fan_in))."""
    keys = jax.random.split(key, 6)

    def linear(kw, kb, fan_in, fan_out, w_shape, b_shape):
        bound = 1.0 / jnp.sqrt(jnp.float32(fan_in))
        w = jax.random.uniform(kw, w_shape, jnp.float32, -bound, bound)
        b = jax.random.uniform(kb, b_shape, jnp.float32, -bound, bound)
        return w, b

    # w1/w2 stored as (in, out); w3 stored as a (1, hidden) row; b3 as (1, 1).
    w1, b1 = linear(keys[0], keys[1], state_dim, hidden_size,
                    (state_dim, hidden_size), (1, hidden_size))
    w2, b2 = linear(keys[2], keys[3], hidden_size, hidden_size,
                    (hidden_size, hidden_size), (1, hidden_size))
    w3, b3 = linear(keys[4], keys[5], hidden_size, 1,
                    (1, hidden_size), (1, 1))
    return (w1, b1, w2, b2, w3, b3)


def _reference_forward(x, params):
    w1, b1, w2, b2, w3, b3 = params
    h1 = jnp.maximum(x @ w1 + b1, 0.0)
    h2 = jnp.maximum(h1 @ w2 + b2, 0.0)
    return h2 @ w3.T + b3


if __name__ == "__main__":
    key = jax.random.PRNGKey(0)
    k_param, k_x1, k_x2 = jax.random.split(key, 3)

    state_dim, hidden = 8, 128
    params = init_critic_params(k_param, state_dim, hidden)

    # Case 1: small batch, not a multiple of the tile -> exercises padding +
    # a 2-step grid with an explicit small tile.
    B1 = 200
    x1 = jax.random.normal(k_x1, (B1, state_dim), dtype=jnp.float32)
    out1 = jax.block_until_ready(critic_forward(x1, params, block_b=128))
    ref1 = _reference_forward(x1, params)
    assert out1.shape == (B1, 1)
    assert jnp.allclose(out1, ref1, atol=1e-4, rtol=1e-4), "mismatch vs reference (case 1)"

    # Case 2: default large tile -> exercises the multi-sub-tile inner loop
    # (block_b_eff=640, sub_b=128) and padding.
    B2 = 520
    x2 = jax.random.normal(k_x2, (B2, state_dim), dtype=jnp.float32)
    out2 = jax.block_until_ready(critic_forward(x2, params))
    ref2 = _reference_forward(x2, params)
    assert out2.shape == (B2, 1)
    assert jnp.allclose(out2, ref2, atol=1e-4, rtol=1e-4), "mismatch vs reference (case 2)"

    # TODO(synk): optionally cast x/w1/w2 to bfloat16 for ~2x MXU rate on v6e/v7x
    # (kept f32 here so results match the f32 reference bit-for-bit-ish).
    print("KERNEL_OK")
</pallas_src>

<mosaic_0001>
module attributes {stable_mosaic.version = 11 : i64} {
  func.func @_critic_kernel(%arg0: i32, %arg1: memref<128x8xf32, #tpu.memory_space<vmem>>, %arg2: memref<8x128xf32, #tpu.memory_space<vmem>>, %arg3: memref<1x128xf32, #tpu.memory_space<vmem>>, %arg4: memref<128x128xf32, #tpu.memory_space<vmem>>, %arg5: memref<1x128xf32, #tpu.memory_space<vmem>>, %arg6: memref<1x128xf32, #tpu.memory_space<vmem>>, %arg7: memref<1x1xf32, #tpu.memory_space<vmem>>, %arg8: memref<1x128xf32, #tpu.memory_space<vmem>>) attributes {dimension_semantics = [#tpu.dimension_semantics<parallel>], iteration_bounds = array<i64: 2>, scalar_prefetch = 0 : i64, scratch_operands = 0 : i64, tpu.core_type = #tpu.core_type<tc>, window_params = [{transform_indices = @transform_0, window_bounds = array<i64: 128, 8>}, {pipeline_mode = #tpu.pipeline_mode<synchronous>, transform_indices = @transform_1, window_bounds = array<i64: 8, 128>}, {pipeline_mode = #tpu.pipeline_mode<synchronous>, transform_indices = @transform_2, window_bounds = array<i64: 1, 128>}, {pipeline_mode = #tpu.pipeline_mode<synchronous>, transform_indices = @transform_3, window_bounds = array<i64: 128, 128>}, {pipeline_mode = #tpu.pipeline_mode<synchronous>, transform_indices = @transform_4, window_bounds = array<i64: 1, 128>}, {pipeline_mode = #tpu.pipeline_mode<synchronous>, transform_indices = @transform_5, window_bounds = array<i64: 1, 128>}, {pipeline_mode = #tpu.pipeline_mode<synchronous>, transform_indices = @transform_6, window_bounds = array<i64: 1, 1>}, {transform_indices = @transform_7, window_bounds = array<i64: 1, 128>}]} {
    %c0 = arith.constant 0 : index
    %c0_0 = arith.constant 0 : index
    %0 = vector.load %arg2[%c0, %c0_0] : memref<8x128xf32, #tpu.memory_space<vmem>>, vector<8x128xf32>
    %c0_1 = arith.constant 0 : index
    %c0_2 = arith.constant 0 : index
    %1 = vector.load %arg3[%c0_1, %c0_2] : memref<1x128xf32, #tpu.memory_space<vmem>>, vector<1x128xf32>
    %c0_3 = arith.constant 0 : index
    %c0_4 = arith.constant 0 : index
    %2 = vector.load %arg4[%c0_3, %c0_4] : memref<128x128xf32, #tpu.memory_space<vmem>>, vector<128x128xf32>
    %c0_5 = arith.constant 0 : index
    %c0_6 = arith.constant 0 : index
    %3 = vector.load %arg5[%c0_5, %c0_6] : memref<1x128xf32, #tpu.memory_space<vmem>>, vector<1x128xf32>
    %c0_7 = arith.constant 0 : index
    %c0_8 = arith.constant 0 : index
    %4 = vector.load %arg6[%c0_7, %c0_8] : memref<1x128xf32, #tpu.memory_space<vmem>>, vector<1x128xf32>
    %c0_9 = arith.constant 0 : index
    %c0_10 = arith.constant 0 : index
    %5 = vector.load %arg7[%c0_9, %c0_10] : memref<1x1xf32, #tpu.memory_space<vmem>>, vector<1x1xf32>
    %c0_11 = arith.constant 0 : index
    %c0_12 = arith.constant 0 : index
    %6 = vector.load %arg1[%c0_11, %c0_12] : memref<128x8xf32, #tpu.memory_space<vmem>>, vector<128x8xf32>
    %cst = arith.constant dense<0.000000e+00> : vector<128x128xf32>
    %7 = tpu.matmul %6, %0, %cst {dimension_numbers = #tpu.dot_dimension_numbers<[1], [0], [0], [1], [0, 0, 1, 1], [], []>} : vector<128x8xf32>, vector<8x128xf32>, vector<128x128xf32> -> vector<128x128xf32>
    %8 = vector.broadcast %1 : vector<1x128xf32> to vector<128x128xf32>
    %9 = arith.addf %7, %8 : vector<128x128xf32>
    %cst_13 = arith.constant 0.000000e+00 : f32
    %10 = vector.broadcast %cst_13 : f32 to vector<128x128xf32>
    %11 = arith.maximumf %9, %10 : vector<128x128xf32>
    %cst_14 = arith.constant dense<0.000000e+00> : vector<128x128xf32>
    %12 = tpu.matmul %11, %2, %cst_14 {dimension_numbers = #tpu.dot_dimension_numbers<[1], [0], [0], [1], [0, 0, 1, 1], [], []>} : vector<128x128xf32>, vector<128x128xf32>, vector<128x128xf32> -> vector<128x128xf32>
    %13 = vector.broadcast %3 : vector<1x128xf32> to vector<128x128xf32>
    %14 = arith.addf %12, %13 : vector<128x128xf32>
    %cst_15 = arith.constant 0.000000e+00 : f32
    %15 = vector.broadcast %cst_15 : f32 to vector<128x128xf32>
    %16 = arith.maximumf %14, %15 : vector<128x128xf32>
    %17 = vector.broadcast %4 : vector<1x128xf32> to vector<128x128xf32>
    %18 = arith.mulf %16, %17 : vector<128x128xf32>
    %cst_16 = arith.constant dense<0.000000e+00> : vector<128xf32>
    %19 = vector.multi_reduction <add>, %18, %cst_16 [1] : vector<128x128xf32> to vector<128xf32>
    %20 = vector.shape_cast %19 : vector<128xf32> to vector<1x128xf32>
    %21 = vector.broadcast %5 : vector<1x1xf32> to vector<1x128xf32>
    %22 = arith.addf %20, %21 : vector<1x128xf32>
    %c0_17 = arith.constant 0 : index
    %c0_18 = arith.constant 0 : index
    %23 = vector.load %arg8[%c0_17, %c0_18] : memref<1x128xf32, #tpu.memory_space<vmem>>, vector<1x128xf32>
    tpu.vector_store %arg8[%c0_17, %c0_18], %22 {strides = array<i32>} : memref<1x128xf32, #tpu.memory_space<vmem>>, vector<1x128xf32>,
    return
  }
  func.func @transform_0(%arg0: i32) -> (i32, i32) {
    %c0_i32 = arith.constant 0 : i32
    %c0_i32_0 = arith.constant 0 : i32
    return %arg0, %c0_i32 : i32, i32
  }
  func.func @transform_1(%arg0: i32) -> (i32, i32) {
    %c0_i32 = arith.constant 0 : i32
    %c0_i32_0 = arith.constant 0 : i32
    %c0_i32_1 = arith.constant 0 : i32
    return %c0_i32, %c0_i32_0 : i32, i32
  }
  func.func @transform_2(%arg0: i32) -> (i32, i32) {
    %c0_i32 = arith.constant 0 : i32
    %c0_i32_0 = arith.constant 0 : i32
    %c0_i32_1 = arith.constant 0 : i32
    return %c0_i32, %c0_i32_0 : i32, i32
  }
  func.func @transform_3(%arg0: i32) -> (i32, i32) {
    %c0_i32 = arith.constant 0 : i32
    %c0_i32_0 = arith.constant 0 : i32
    %c0_i32_1 = arith.constant 0 : i32
    return %c0_i32, %c0_i32_0 : i32, i32
  }
  func.func @transform_4(%arg0: i32) -> (i32, i32) {
    %c0_i32 = arith.constant 0 : i32
    %c0_i32_0 = arith.constant 0 : i32
    %c0_i32_1 = arith.constant 0 : i32
    return %c0_i32, %c0_i32_0 : i32, i32
  }
  func.func @transform_5(%arg0: i32) -> (i32, i32) {
    %c0_i32 = arith.constant 0 : i32
    %c0_i32_0 = arith.constant 0 : i32
    %c0_i32_1 = arith.constant 0 : i32
    return %c0_i32, %c0_i32_0 : i32, i32
  }
  func.func @transform_6(%arg0: i32) -> (i32, i32) {
    %c0_i32 = arith.constant 0 : i32
    %c0_i32_0 = arith.constant 0 : i32
    %c0_i32_1 = arith.constant 0 : i32
    return %c0_i32, %c0_i32_0 : i32, i32
  }
  func.func @transform_7(%arg0: i32) -> (i32, i32) {
    %c0_i32 = arith.constant 0 : i32
    %c0_i32_0 = arith.constant 0 : i32
    return %c0_i32, %arg0 : i32, i32
  }
}

</mosaic_0001>

<bundles_post_ra>
// kernel: critic_forward.1
= control target key start
LH: loop header
LB: loop body
LE: loop exit
PB: predicated region body
PF: predicated region fallthrough
CT: control target
= control target key end

     0   :  { %s1224_s26 = smov 0   ;;  %s1435_s0 = inlined_call_operand.vmem [shape: f32[256,8], index: 0, kind: input, shape index: {}]   ;;  %s1436_s1 = inlined_call_operand.vmem [shape: f32[8,128], index: 1, kind: input, shape index: {}]   ;;  %s1437_s2 = inlined_call_operand.vmem [shape: f32[1,128], index: 2, kind: input, shape index: {}]   ;;  %s1438_s3 = inlined_call_operand.vmem [shape: f32[128,128], index: 3, kind: input, shape index: {}]   ;;  %s1439_s4 = inlined_call_operand.vmem [shape: f32[1,128], index: 4, kind: input, shape index: {}]   ;;  %s1440_s5 = inlined_call_operand.vmem [shape: f32[1,128], index: 5, kind: input, shape index: {}]   ;;  %s1441_s6 = inlined_call_operand.<no memory space> [shape: f32[1,1], index: 6, kind: input, shape index: {}]   ;;  %s1442_s7 = inlined_call_operand.vmem [shape: f32[1,256], index: 7, kind: output, shape index: {}]  }
   0x1   :  { %v12_v0 = vstv %s1441_s6 }
   0x2   :  { %13 = vst [vmem:[#allocation2] sm:$0x1] %v12_v0 }
   0x3 LB: > { %s1230_s27 = sadd.s32 4294967295, %s1178_s26   ;;  %p958_p0 = scmp.ge.s32.totalorder %s1178_s26, 1  ;;  %s1178_s26 = sphi %s1224_s26, %s19_s26  }
   0x4   : > { %p240_p1 = scmp.lt.s32.totalorder %s1178_s26, 3 }
   0x6   : > { %p241_p2 = pnand %p958_p0, %p240_p1 }
   0x7   : > { %v279_v1 = vld [vmem:[%s1436_s1] sm:$0xff] (!%p241_p2)  ;;  %s959_s6 = sshll.u32 (!%p241_p2), %s1230_s27, 4  ;;  %v282_v3 = vld [vmem:[%s1438_s3 + $0x8] sm:$0xff] (!%p241_p2)  ;;  %v283_v5 = vld [vmem:[%s1438_s3 + $0x10] sm:$0xff] (!%p241_p2)  ;;  %vm322_vm0 = vcmask (!%p241_p2), 64512   ;;  %vm805_vm1 = vcmask (!%p241_p2), 130112  }
   0x8   : > { %244 = sbr.rel (%p241_p2) target bundleno = 673 (0x2a1), region = 48  ;;  %v281_v2 = vld [vmem:[%s1438_s3] sm:$0xff] (!%p241_p2)  ;;  %1031 = vmatprep.subr.mxu0 (!%p241_p2), %v279_v1  ;;  %p271_p3 = scmp.lt.s32.totalorder (!%p241_p2), %s959_s6, 31  ;;  %v284_v6 = vld [vmem:[%s1438_s3 + $0x18] sm:$0xff] (!%p241_p2)  ;;  %v286_v9 = vld [vmem:[%s1438_s3 + $0x28] sm:$0xff] (!%p241_p2)  ;;  %vm812_vm2 = vcmask (!%p241_p2), 195712  }
   0x9   : > { %v1113_v4 = vpack.c.bf16 (!%p241_p2), %v282_v3, %v281_v2  ;;  %1032 = vmatpush3.msra.mxu0 (!%p241_p2), %v279_v1  ;;  %v1117_v7 = vpack.c.bf16 (!%p241_p2), %v284_v6, %v283_v5  ;;  %v285_v8 = vld [vmem:[%s1438_s3 + $0x20] sm:$0xff] (!%p241_p2)  ;;  %v287_v14 = vld [vmem:[%s1438_s3 + $0x30] sm:$0xff] (!%p241_p2)  ;;  %v288_v15 = vld [vmem:[%s1438_s3 + $0x38] sm:$0xff] (!%p241_p2)  ;;  %vm819_vm3 = vcmask (!%p241_p2), 261312   ;;  %vm826_vm4 = vcmask (!%p241_p2), 326912   ;;  %p276_p4 = scmp.lt.s32.totalorder (!%p241_p2), %s1230_s27, 1 }
   0xa   : > { %v1121_v13 = vpack.c.bf16 (!%p241_p2), %v286_v9, %v285_v8  ;;  %v1125_v18 = vpack.c.bf16 (!%p241_p2), %v288_v15, %v287_v14  ;;  %v289_v19 = vld [vmem:[%s1438_s3 + $0x40] sm:$0xff] (!%p241_p2)  ;;  %v290_v20 = vld [vmem:[%s1438_s3 + $0x48] sm:$0xff] (!%p241_p2)  ;;  %v291_v24 = vld [vmem:[%s1438_s3 + $0x50] sm:$0xff] (!%p241_p2)  ;;  %vm833_vm5 = vcmask (!%p241_p2), 392512   ;;  %vm840_vm6 = vcmask (!%p241_p2), 458112  }
   0xb   : > { %1114 = vmatprep.subr.bf16.mxu0 (!%p241_p2), %v1113_v4  ;;  %1145 = vmatprep.subr.bf16.mxu1 (!%p241_p2), %v1113_v4  ;;  %v1129_v23 = vpack.c.bf16 (!%p241_p2), %v290_v20, %v289_v19  ;;  %v292_v25 = vld [vmem:[%s1438_s3 + $0x58] sm:$0xff] (!%p241_p2)  ;;  %v293_v29 = vld [vmem:[%s1438_s3 + $0x60] sm:$0xff] (!%p241_p2)  ;;  %v294_v30 = vld [vmem:[%s1438_s3 + $0x68] sm:$0xff] (!%p241_p2)  ;;  %vm847_vm7 = vcmask (!%p241_p2), 523712   ;;  %vm854_vm8 = vcmask (!%p241_p2), 589312   ;;  %vm861_vm9 = vcmask (!%p241_p2), 654912  }
   0xc   : > { %1153 = vmatpush3.bf16.msra.mxu1 (!%p241_p2), %v1113_v4  ;;  %v1133_v28 = vpack.c.bf16 (!%p241_p2), %v292_v25, %v291_v24  ;;  %v1137_v33 = vpack.c.bf16 (!%p241_p2), %v294_v30, %v293_v29  ;;  %v295_v39 = vld [vmem:[%s1438_s3 + $0x70] sm:$0xff] (!%p241_p2)  ;;  %v296_v40 = vld [vmem:[%s1438_s3 + $0x78] sm:$0xff] (!%p241_p2)  ;;  %v961_v42 = vld [vmem:[%s1437_s2] ss:$0 sm:$0xff] (!%p241_p2)  ;;  %vm868_vm10 = vcmask (!%p241_p2), 720512   ;;  %vm875_vm11 = vcmask (!%p241_p2), 786112  }
   0xd   : > { %1146 = vmatprep.subr.bf16.mxu1 (!%p241_p2), %v1117_v7  ;;  %v1141_v41 = vpack.c.bf16 (!%p241_p2), %v296_v40, %v295_v39  ;;  %vm882_vm12 = vcmask (!%p241_p2), 851712   ;;  %vm889_vm13 = vcmask (!%p241_p2), 917312   ;;  %vm896_vm14 = vcmask (!%p241_p2), 982912  }
   0xe   : > { %vm903_vm15 = vcmask (!%p241_p2), 1048512  }
   0xf   : > { %s1444_s6 = smov (!%p271_p3, %s959_s6), 31  ;;  %s1446_s27 = smov (!%p276_p4, %s1230_s27), 1 }
  0x10   : > { %s960_s19 = sshll.u32 %s1444_s6, 3  ;;  %1154 = vmatpush3.bf16.msra.mxu1 %v1117_v7  ;;  %s278_s30 = scalar_lea.vmem %s1442_s7, %s1446_s27 }
  0x11   : > { %s1259_s22 = scalar_lea.vmem %s1435_s0, %s960_s19  ;;  %1147 = vmatprep.subr.bf16.mxu1 %v1121_v13 }
  0x12   : > { %v300_v10 = vld [vmem:[%s1259_s22] sm:$0xff]  ;;  %v301_v11 = vld [vmem:[%s1259_s22 + $0x8] sm:$0xff]  ;;  %v302_v12 = vld [vmem:[%s1259_s22 + $0x10] sm:$0xff] }
  0x13   : > { %1033 = vmatprep.mubr.msk.f32.mxu0 %vm322_vm0, %v300_v10  ;;  %v303_v16 = vld [vmem:[%s1259_s22 + $0x18] sm:$0xff]  ;;  %v304_v17 = vld [vmem:[%s1259_s22 + $0x20] sm:$0xff]  ;;  %v305_v21 = vld [vmem:[%s1259_s22 + $0x28] sm:$0xff] }
  0x14   : > { %1034 = vmatmul.mubr.msk.f32.vlgmr.msra.gmra.mrb[0].mxu0 %vm322_vm0, %v301_v11  ;;  %1155 = vmatpush3.bf16.msra.mxu1 %v1121_v13  ;;  %v306_v22 = vld [vmem:[%s1259_s22 + $0x30] sm:$0xff]  ;;  %v307_v26 = vld [vmem:[%s1259_s22 + $0x38] sm:$0xff]  ;;  %v308_v27 = vld [vmem:[%s1259_s22 + $0x40] sm:$0xff] }
  0x15   : > { %1036 = vmatprep.mubr.msk.f32.mxu0 %vm322_vm0, %v302_v12  ;;  %1116 = vmatpush3.bf16.msra.mxu0 %v1113_v4  ;;  %v309_v31 = vld [vmem:[%s1259_s22 + $0x48] sm:$0xff]  ;;  %v310_v32 = vld [vmem:[%s1259_s22 + $0x50] sm:$0xff]  ;;  %v311_v34 = vld [vmem:[%s1259_s22 + $0x58] sm:$0xff] }
  0x16   : > { %1118 = vmatprep.subr.bf16.mxu0 %v1117_v7  ;;  %1148 = vmatprep.subr.bf16.mxu1 %v1125_v18  ;;  %v312_v35 = vld [vmem:[%s1259_s22 + $0x60] sm:$0xff]  ;;  %v313_v36 = vld [vmem:[%s1259_s22 + $0x68] sm:$0xff]  ;;  %v314_v37 = vld [vmem:[%s1259_s22 + $0x70] sm:$0xff] }
  0x17   : > { %v315_v38 = vld [vmem:[%s1259_s22 + $0x78] sm:$0xff] }
  0x18   : > { %1037 = vmatmul.mubr.msk.f32.gmra.mrb[2].mxu0 %vm322_vm0, %v303_v16  ;;  %1156 = vmatpush3.bf16.msra.mxu1 %v1125_v18 }
  0x19   : > { %1039 = vmatprep.mubr.msk.f32.mxu0 %vm322_vm0, %v304_v17  ;;  %1120 = vmatpush3.bf16.msra.mxu0 %v1117_v7 }
  0x1a   : > { %1122 = vmatprep.subr.bf16.mxu0 %v1121_v13  ;;  %1149 = vmatprep.subr.bf16.mxu1 %v1129_v23 }
  0x1c   : > { %1040 = vmatmul.mubr.msk.f32.gmra.mrb[4].mxu0 %vm322_vm0, %v305_v21  ;;  %1157 = vmatpush3.bf16.msra.mxu1 %v1129_v23 }
  0x1d   : > { %1042 = vmatprep.mubr.msk.f32.mxu0 %vm322_vm0, %v306_v22  ;;  %1124 = vmatpush3.bf16.msra.mxu0 %v1121_v13 }
  0x1e   : > { %1126 = vmatprep.subr.bf16.mxu0 %v1125_v18  ;;  %1150 = vmatprep.subr.bf16.mxu1 %v1133_v28 }
  0x20   : > { %1043 = vmatmul.mubr.msk.f32.gmra.mrb[6].mxu0 %vm322_vm0, %v307_v26  ;;  %1158 = vmatpush3.bf16.msra.mxu1 %v1133_v28 }
  0x21   : > { %1045 = vmatprep.mubr.msk.f32.mxu0 %vm322_vm0, %v308_v27  ;;  %1128 = vmatpush3.bf16.msra.mxu0 %v1125_v18  ;;  %v1180_v27 = vmov 0  }
  0x22   : > { %1130 = vmatprep.subr.bf16.mxu0 %v1129_v23  ;;  %1151 = vmatprep.subr.bf16.mxu1 %v1137_v33 }
  0x23   : > { %1170 = vset.pattern.permute.xlu1 %v1180_v27  ;;  %1171 = vset.pattern.permute.xlu0 %v1180_v27 }
  0x24   : > { %1046 = vmatmul.mubr.msk.f32.gmra.mrb[8].mxu0 %vm322_vm0, %v309_v31  ;;  %1159 = vmatpush3.bf16.msra.mxu1 %v1137_v33 }
  0x25   : > { %1048 = vmatprep.mubr.msk.f32.mxu0 %vm322_vm0, %v310_v32  ;;  %1132 = vmatpush3.bf16.msra.mxu0 %v1129_v23 }
  0x26   : > { %1134 = vmatprep.subr.bf16.mxu0 %v1133_v28  ;;  %1152 = vmatprep.subr.bf16.mxu1 %v1141_v41 }
  0x28   : > { %1049 = vmatmul.mubr.msk.f32.gmra.mrb[10].mxu0 %vm322_vm0, %v311_v34  ;;  %1160 = vmatpush3.bf16.msra.mxu1 %v1141_v41 }
  0x29   : > { %1051 = vmatprep.mubr.msk.f32.mxu0 %vm322_vm0, %v312_v35  ;;  %1136 = vmatpush3.bf16.msra.mxu0 %v1133_v28  ;;  %v1329_v28 = vld [vmem:[%s1439_s4] ss:$0 sm:$0xff] }
  0x2a   : > { %1138 = vmatprep.subr.bf16.mxu0 %v1137_v33 }
  0x2c   : > { %1052 = vmatmul.mubr.msk.f32.gmra.mrb[12].mxu0 %vm322_vm0, %v313_v36 }
  0x2d   : > { %1054 = vmatprep.mubr.msk.f32.mxu0 %vm322_vm0, %v314_v37  ;;  %1140 = vmatpush3.bf16.msra.mxu0 %v1137_v33  ;;  %v1336_v33 = vld [vmem:[%s1440_s5] ss:$0 sm:$0xff] }
  0x2e   : > { %1142 = vmatprep.subr.bf16.mxu0 %v1141_v41 }
  0x30   : > { %1055 = vmatmul.mubr.msk.f32.gmra.mrb[14].mxu0 %vm322_vm0, %v315_v38 }
  0x31   : > { %1144 = vmatpush3.bf16.msra.mxu0 %v1141_v41 }
  0xe7   : > { %v1035_v43 = vpop.f32.mrb[0].mxu0 }
  0xe8   : > { %v443_v44 = vadd.f32 %v1035_v43, %v961_v42  ;;  %v437_v45 = vpop.f32.mrb[1].mxu0 }
  0xe9   : > { %v438_v46 = vadd.f32 %v961_v42, %v437_v45 }
  0xea   : > { %v517_v49 = vmax.f32 %v443_v44, 0.0 }
  0xeb   : > { %v516_v47 = vmax.f32 %v438_v46, 0.0  ;;  %v1038_v48 = vpop.f32.mrb[2].mxu0 }
  0xec   : > { %v453_v50 = vadd.f32 %v1038_v48, %v961_v42  ;;  %v447_v51 = vpop.f32.mrb[3].mxu0 }
  0xed   : > { %v448_v52 = vadd.f32 %v961_v42, %v447_v51  ;;  %1089 = vmatprep.mubr.f32.mxu0 %v516_v47 }
  0xee   : > { %1090 = vmatmul.mubr.f32.vlgmr.msra.gmra.mrb[16].mxu0 %v517_v49  ;;  %v519_v55 = vmax.f32 %v453_v50, 0.0 }
  0xef   : > { %v518_v53 = vmax.f32 %v448_v52, 0.0  ;;  %v1041_v54 = vpop.f32.mrb[4].mxu0 }
  0xf0   : > { %v463_v56 = vadd.f32 %v1041_v54, %v961_v42  ;;  %v457_v57 = vpop.f32.mrb[5].mxu0 }
  0xf1   : > { %v458_v58 = vadd.f32 %v961_v42, %v457_v57  ;;  %1092 = vmatprep.mubr.f32.mxu0 %v518_v53 }
  0xf2   : > { %v521_v59 = vmax.f32 %v463_v56, 0.0  ;;  %1093 = vmatmul.mubr.f32.gmra.mrb[18].mxu0 %v519_v55 }
  0xf3   : > { %v520_v60 = vmax.f32 %v458_v58, 0.0  ;;  %v1044_v61 = vpop.f32.mrb[6].mxu0 }
  0xf4   : > { %v473_v62 = vadd.f32 %v1044_v61, %v961_v42  ;;  %v467_v63 = vpop.f32.mrb[7].mxu0 }
  0xf5   : > { %1095 = vmatprep.mubr.f32.mxu0 %v520_v60  ;;  %v468_v0 = vadd.f32 %v961_v42, %v467_v63 }
  0xf6   : > { %v523_v1 = vmax.f32 %v473_v62, 0.0  ;;  %1096 = vmatmul.mubr.f32.gmra.mrb[20].mxu0 %v521_v59 }
  0xf7   : > { %v522_v2 = vmax.f32 %v468_v0, 0.0  ;;  %v1047_v3 = vpop.f32.mrb[8].mxu0 }
  0xf8   : > { %v483_v4 = vadd.f32 %v1047_v3, %v961_v42  ;;  %v477_v5 = vpop.f32.mrb[9].mxu0 }
  0xf9   : > { %1098 = vmatprep.mubr.f32.mxu1 %v522_v2  ;;  %v478_v6 = vadd.f32 %v961_v42, %v477_v5 }
  0xfa   : > { %1099 = vmatmul.mubr.f32.vlgmr.msra.gmra.mrb[0].mxu1 %v523_v1  ;;  %v525_v7 = vmax.f32 %v483_v4, 0.0 }
  0xfb   : > { %v524_v8 = vmax.f32 %v478_v6, 0.0  ;;  %v1050_v9 = vpop.f32.mrb[10].mxu0 }
  0xfc   : > { %v493_v10 = vadd.f32 %v1050_v9, %v961_v42  ;;  %v487_v11 = vpop.f32.mrb[11].mxu0 }
  0xfd   : > { %1101 = vmatprep.mubr.f32.mxu1 %v524_v8  ;;  %v488_v12 = vadd.f32 %v961_v42, %v487_v11 }
  0xfe   : > { %v527_v13 = vmax.f32 %v493_v10, 0.0  ;;  %1102 = vmatmul.mubr.f32.gmra.mrb[2].mxu1 %v525_v7 }
  0xff   : > { %v526_v14 = vmax.f32 %v488_v12, 0.0  ;;  %v1053_v15 = vpop.f32.mrb[12].mxu0 }
 0x100   : > { %v503_v16 = vadd.f32 %v1053_v15, %v961_v42  ;;  %v497_v17 = vpop.f32.mrb[13].mxu0 }
 0x101   : > { %v498_v18 = vadd.f32 %v961_v42, %v497_v17  ;;  %1104 = vmatprep.mubr.f32.mxu1 %v526_v14 }
 0x102   : > { %v529_v19 = vmax.f32 %v503_v16, 0.0  ;;  %1105 = vmatmul.mubr.f32.gmra.mrb[4].mxu1 %v527_v13 }
 0x103   : > { %v528_v20 = vmax.f32 %v498_v18, 0.0  ;;  %v1056_v21 = vpop.f32.mrb[14].mxu0 }
 0x104   : > { %v513_v22 = vadd.f32 %v1056_v21, %v961_v42  ;;  %v507_v23 = vpop.f32.mrb[15].mxu0  ;;  %v299_v21 = vld [vmem:[#allocation2] sm:$0x1] }
 0x105   : > { %1107 = vmatprep.mubr.f32.mxu1 %v528_v20  ;;  %v508_v24 = vadd.f32 %v961_v42, %v507_v23 }
 0x106   : > { %v531_v25 = vmax.f32 %v513_v22, 0.0  ;;  %1108 = vmatmul.mubr.f32.gmra.mrb[6].mxu1 %v529_v19 }
 0x107   : > { %v530_v26 = vmax.f32 %v508_v24, 0.0 }
 0x109   : > { %1110 = vmatprep.mubr.f32.mxu1 %v530_v26 }
 0x10a   : > { %1111 = vmatmul.mubr.f32.gmra.mrb[8].mxu1 %v531_v25 }
 0x1c1   : > { %v1091_v29 = vpop.f32.mrb[16].mxu0 }
 0x1c2   : > { %v610_v30 = vadd.f32 %v1091_v29, %v1329_v28  ;;  %v604_v31 = vpop.f32.mrb[17].mxu0 }
 0x1c3   : > { %v605_v32 = vadd.f32 %v1329_v28, %v604_v31 }
 0x1c4   : > { %v684_v34 = vmax.f32 %v610_v30, 0.0 }
 0x1c5   : > { %v1094_v35 = vpop.f32.mrb[18].mxu0  ;;  %v683_v36 = vmax.f32 %v605_v32, 0.0 }
 0x1c6   : > { %v620_v37 = vadd.f32 %v1094_v35, %v1329_v28  ;;  %v614_v38 = vpop.f32.mrb[19].mxu0  ;;  %v706_v39 = vmul.f32 %v1336_v33, %v684_v34 }
 0x1c7   : > { %v615_v40 = vadd.f32 %v1329_v28, %v614_v38  ;;  %v705_v47 = vmul.f32 %v1336_v33, %v683_v36 }
 0x1c8   : > { %v686_v41 = vmax.f32 %v620_v37, 0.0  ;;  %723 = vadd.xlane.f32.xlu0 %v706_v39 }
 0x1c9   : > { %v1097_v42 = vpop.f32.mrb[20].mxu0  ;;  %v685_v43 = vmax.f32 %v615_v40, 0.0 }
 0x1ca   : > { %v630_v44 = vadd.f32 %v1097_v42, %v1329_v28  ;;  %v624_v45 = vpop.f32.mrb[21].mxu0  ;;  %v708_v46 = vmul.f32 %v1336_v33, %v686_v41 }
 0x1cb   : > { %v625_v48 = vadd.f32 %v1329_v28, %v624_v45  ;;  %v707_v53 = vmul.f32 %v1336_v33, %v685_v43 }
 0x1cc   : > { %727 = vadd.xlane.f32.xlu1 %v708_v46  ;;  %721 = vadd.xlane.f32.xlu0 %v705_v47  ;;  %v688_v51 = vmax.f32 %v630_v44, 0.0 }
 0x1cd   : > { %v687_v49 = vmax.f32 %v625_v48, 0.0  ;;  %v1100_v50 = vpop.f32.mrb[0].mxu1 }
 0x1ce   : > { %v640_v52 = vadd.f32 %v1100_v50, %v1329_v28  ;;  %v634_v54 = vpop.f32.mrb[1].mxu1  ;;  %v710_v60 = vmul.f32 %v1336_v33, %v688_v51 }
 0x1cf   : > { %v709_v55 = vmul.f32 %v1336_v33, %v687_v49  ;;  %v635_v56 = vadd.f32 %v1329_v28, %v634_v54 }
 0x1d0   : > { %v690_v57 = vmax.f32 %v640_v52, 0.0  ;;  %725 = vadd.xlane.f32.xlu1 %v707_v53 }
 0x1d1   : > { %729 = vadd.xlane.f32.xlu0 %v709_v55  ;;  %v689_v58 = vmax.f32 %v635_v56, 0.0  ;;  %v1103_v59 = vpop.f32.mrb[2].mxu1 }
 0x1d2   : > { %v712_v61 = vmul.f32 %v1336_v33, %v690_v57  ;;  %v650_v62 = vadd.f32 %v1103_v59, %v1329_v28  ;;  %v644_v63 = vpop.f32.mrb[3].mxu1 }
 0x1d3   : > { %v711_v1 = vmul.f32 %v1336_v33, %v689_v58  ;;  %v645_v2 = vadd.f32 %v1329_v28, %v644_v63 }
 0x1d4   : > { %731 = vadd.xlane.f32.xlu1 %v710_v60  ;;  %v692_v0 = vmax.f32 %v650_v62, 0.0 }
 0x1d5   : > { %735 = vadd.xlane.f32.xlu0 %v712_v61  ;;  %v1106_v3 = vpop.f32.mrb[4].mxu1  ;;  %v691_v7 = vmax.f32 %v645_v2, 0.0 }
 0x1d6   : > { %v660_v4 = vadd.f32 %v1106_v3, %v1329_v28  ;;  %v654_v5 = vpop.f32.mrb[5].mxu1  ;;  %v714_v8 = vmul.f32 %v1336_v33, %v692_v0 }
 0x1d7   : > { %v655_v9 = vadd.f32 %v1329_v28, %v654_v5  ;;  %v713_v14 = vmul.f32 %v1336_v33, %v691_v7 }
 0x1d8   : > { %v694_v6 = vmax.f32 %v660_v4, 0.0 }
 0x1d9   : > { %733 = vadd.xlane.f32.xlu0 %v711_v1  ;;  %v1109_v10 = vpop.f32.mrb[6].mxu1  ;;  %v693_v13 = vmax.f32 %v655_v9, 0.0 }
 0x1da   : > { %v664_v11 = vpop.f32.mrb[7].mxu1  ;;  %v716_v12 = vmul.f32 %v1336_v33, %v694_v6  ;;  %v670_v15 = vadd.f32 %v1109_v10, %v1329_v28 }
 0x1db   : > { %v715_v19 = vmul.f32 %v1336_v33, %v693_v13  ;;  %v665_v20 = vadd.f32 %v1329_v28, %v664_v11 }
 0x1dc   : > { %v696_v18 = vmax.f32 %v670_v15, 0.0 }
 0x1dd   : > { %739 = vadd.xlane.f32.xlu0 %v714_v8  ;;  %v1112_v16 = vpop.f32.mrb[8].mxu1  ;;  %v695_v22 = vmax.f32 %v665_v20, 0.0 }
 0x1de   : > { %v674_v17 = vpop.f32.mrb[9].mxu1  ;;  %v718_v23 = vmul.f32 %v1336_v33, %v696_v18  ;;  %v680_v25 = vadd.f32 %v1112_v16, %v1329_v28 }
 0x1df   : > { %v675_v24 = vadd.f32 %v1329_v28, %v674_v17  ;;  %v717_v27 = vmul.f32 %v1336_v33, %v695_v22  ;;  %v758_v28 = vlaneseq }
 0x1e0   : > { %v698_v29 = vmax.f32 %v680_v25, 0.0 }
 0x1e1   : > { %737 = vadd.xlane.f32.xlu0 %v713_v14  ;;  %v697_v26 = vmax.f32 %v675_v24, 0.0  ;;  %v1368_v41 = vshrl.u32 %v758_v28, 7  ;;  %v1371_v43 = vand.u32 127, %v758_v28 }
 0x1e2   : > { %v720_v31 = vmul.f32 %v1336_v33, %v698_v29 }
 0x1e3   : > { %v719_v30 = vmul.f32 %v1336_v33, %v697_v26  ;;  %v760_v42 = vsub.s32 0, %v1368_v41  ;;  %v800_v46 = vadd.s32 4294967288, %v1371_v43  ;;  %v807_v47 = vadd.s32 4294967280, %v1371_v43 }
 0x1e4   : > { %v798_v51 = vsub.s32 %v1371_v43, %v1368_v41  ;;  %v814_v57 = vadd.s32 4294967272, %v1371_v43  ;;  %v821_v60 = vadd.s32 4294967264, %v1371_v43  ;;  %v828_v0 = vadd.s32 4294967256, %v1371_v43 }
 0x1e5   : > { %755 = vperm.xlu1 %1170, %v299_v21   ;;  %741 = vadd.xlane.f32.xlu0 %v715_v19  ;;  %v803_v52 = vsub.s32 %v800_v46, %v1368_v41  ;;  %v810_v54 = vsub.s32 %v807_v47, %v1368_v41  ;;  %v835_v6 = vadd.s32 4294967248, %v1371_v43  ;;  %v849_v15 = vadd.s32 4294967232, %v1371_v43 }
 0x1e6   : > { %v817_v63 = vsub.s32 %v814_v57, %v1368_v41  ;;  %v824_v3 = vsub.s32 %v821_v60, %v1368_v41  ;;  %v831_v9 = vsub.s32 %v828_v0, %v1368_v41  ;;  %v856_v18 = vadd.s32 4294967224, %v1371_v43 }
 0x1e7   : > { %v838_v11 = vsub.s32 %v835_v6, %v1368_v41  ;;  %v863_v25 = vadd.s32 4294967216, %v1371_v43  ;;  %v884_v28 = vadd.s32 4294967192, %v1371_v43 }
 0x1e8   : > { %v859_v29 = vsub.s32 %v856_v18, %v1368_v41 }
 0x1e9   : > { %747 = vadd.xlane.f32.xlu0 %v718_v23  ;;  %v852_v23 = vsub.s32 %v849_v15, %v1368_v41 }
 0x1ed   : > { %745 = vadd.xlane.f32.xlu0 %v717_v27 }
 0x1f1   : > { %749 = vadd.xlane.f32.xlu0 %v719_v30 }
 0x1f5   : > { %751 = vadd.xlane.f32.xlu0 %v720_v31  ;;  %v870_v31 = vadd.s32 4294967208, %v1371_v43 }
 0x209   : > { %743 = vadd.xlane.f32.xlu1 %v716_v12  ;;  %v842_v12 = vadd.s32 4294967240, %v1371_v43 }
 0x20b   : > { %v845_v21 = vsub.s32 %v842_v12, %v1368_v41 }
 0x255   : > { %v724_v32 = vpop.xlane.xlu0 %723 }
 0x259   : > { %v722_v34 = vpop.xlane.xlu0 %721  ;;  %v728_v35 = vpop.xlane.xlu1 %727 }
 0x25d   : > { %v726_v37 = vpop.xlane.xlu1 %725 }
 0x25e   : > { %v730_v36 = vpop.xlane.xlu0 %729 }
 0x261   : > { %v732_v39 = vpop.xlane.xlu1 %731 }
 0x262   : > { %v736_v38 = vpop.xlane.xlu0 %735 }
 0x265   : > { %v756_v44 = vpop.permute.xlu1 %755 }
 0x266   : > { %v734_v40 = vpop.xlane.xlu0 %733  ;;  %v1373_v33 = vrot.slane %v756_v44, %v760_v42  ;;  %v873_v42 = vsub.s32 %v870_v31, %v1368_v41 }
 0x268   : > { %v762_v49 = vadd.f32 %v1373_v33, %v722_v34  ;;  %v763_v50 = vadd.f32 %v1373_v33, %v724_v32  ;;  %v764_v53 = vadd.f32 %v1373_v33, %v726_v37  ;;  %v765_v61 = vadd.f32 %v1373_v33, %v728_v35 }
 0x269   : > { %v766_v1 = vadd.f32 %v1373_v33, %v730_v36  ;;  %v767_v7 = vadd.f32 %v1373_v33, %v732_v39  ;;  %v768_v14 = vadd.f32 %v1373_v33, %v734_v40  ;;  %v769_v20 = vadd.f32 %v1373_v33, %v736_v38 }
 0x26a   : > { %v740_v45 = vpop.xlane.xlu0 %739  ;;  %v799_v55 = vrot.slane %v762_v49, %v798_v51  ;;  %v804_v56 = vrot.slane %v763_v50, %v803_v52  ;;  %v811_v59 = vrot.slane %v764_v53, %v810_v54  ;;  %v818_v5 = vrot.slane %v765_v61, %v817_v63 }
 0x26b   : > { %v825_v10 = vrot.slane %v766_v1, %v824_v3  ;;  %v832_v17 = vrot.slane %v767_v7, %v831_v9  ;;  %v839_v22 = vrot.slane %v768_v14, %v838_v11  ;;  %v846_v30 = vrot.slane %v769_v20, %v845_v21 }
 0x26c   : > { %v806_v62 = vsel %vm805_vm1, %v804_v56, %v799_v55  ;;  %v866_v34 = vsub.s32 %v863_v25, %v1368_v41  ;;  %v877_v36 = vadd.s32 4294967200, %v1371_v43  ;;  %v771_v37 = vadd.f32 %v1373_v33, %v740_v45 }
 0x26d   : > { %v813_v2 = vsel %vm812_vm2, %v811_v59, %v806_v62  ;;  %v891_v39 = vadd.s32 4294967184, %v1371_v43  ;;  %v898_v40 = vadd.s32 4294967176, %v1371_v43  ;;  %v887_v51 = vsub.s32 %v884_v28, %v1368_v41 }
 0x26e   : > { %v738_v48 = vpop.xlane.xlu0 %737  ;;  %v820_v8 = vsel %vm819_vm3, %v818_v5, %v813_v2  ;;  %v880_v47 = vsub.s32 %v877_v36, %v1368_v41  ;;  %v860_v50 = vrot.slane %v771_v37, %v859_v29 }
 0x26f   : > { %v827_v13 = vsel %vm826_vm4, %v825_v10, %v820_v8  ;;  %v770_v24 = vadd.f32 %v1373_v33, %v738_v48  ;;  %v894_v53 = vsub.s32 %v891_v39, %v1368_v41  ;;  %v901_v55 = vsub.s32 %v898_v40, %v1368_v41 }
 0x270   : > { %v834_v19 = vsel %vm833_vm5, %v832_v17, %v827_v13 }
 0x271   : > { %v841_v26 = vsel %vm840_vm6, %v839_v22, %v834_v19  ;;  %v853_v32 = vrot.slane %v770_v24, %v852_v23 }
 0x272   : > { %v742_v58 = vpop.xlane.xlu0 %741  ;;  %v848_v38 = vsel %vm847_vm7, %v846_v30, %v841_v26 }
 0x273   : > { %v772_v35 = vadd.f32 %v1373_v33, %v742_v58  ;;  %v855_v44 = vsel %vm854_vm8, %v853_v32, %v848_v38 }
 0x274   : > { %v862_v56 = vsel %vm861_vm9, %v860_v50, %v855_v44 }
 0x275   : > { %v867_v46 = vrot.slane %v772_v35, %v866_v34 }
 0x276   : > { %v748_v4 = vpop.xlane.xlu0 %747 }
 0x277   : > { %v775_v43 = vadd.f32 %v1373_v33, %v748_v4  ;;  %v869_v59 = vsel %vm868_vm10, %v867_v46, %v862_v56 }
 0x279   : > { %v888_v61 = vrot.slane %v775_v43, %v887_v51 }
 0x27a   : > { %v746_v16 = vpop.xlane.xlu0 %745 }
 0x27b   : > { %v774_v45 = vadd.f32 %v1373_v33, %v746_v16 }
 0x27d   : > { %v881_v60 = vrot.slane %v774_v45, %v880_v47 }
 0x27e   : > { %v750_v27 = vpop.xlane.xlu0 %749 }
 0x27f   : > { %v776_v54 = vadd.f32 %v1373_v33, %v750_v27 }
 0x281   : > { %v895_v63 = vrot.slane %v776_v54, %v894_v53 }
 0x282   : > { %v752_v48 = vpop.xlane.xlu0 %751 }
 0x283   : > { %v777_v57 = vadd.f32 %v1373_v33, %v752_v48 }
 0x285   : > { %v902_v41 = vrot.slane %v777_v57, %v901_v55 }
 0x296   : > { %v744_v49 = vpop.xlane.xlu1 %743 }
 0x297   : > { %v773_v52 = vadd.f32 %v1373_v33, %v744_v49 }
 0x299   : > { %v874_v58 = vrot.slane %v773_v52, %v873_v42 }
 0x29b   : > { %v876_v62 = vsel %vm875_vm11, %v874_v58, %v869_v59 }
 0x29c   : > { %v883_v0 = vsel %vm882_vm12, %v881_v60, %v876_v62 }
 0x29d   : > { %v890_v33 = vsel %vm889_vm13, %v888_v61, %v883_v0 }
 0x29e   : > { %v897_v1 = vsel %vm896_vm14, %v895_v63, %v890_v33 }
 0x29f   : > { %v904_v2 = vsel %vm903_vm15, %v902_v41, %v897_v1 }
 0x2a0   : > { %906 = vst [vmem:[%s278_s30] sm:$0x1] %v904_v2 }
 0x2a1 PF: > { %s19_s26 = sadd.s32 1, %s1178_s26  }
 0x2a2   : > { %p16_p5 = scmp.ge.s32.totalorder %s19_s26, 4  }
 0x2a4   :  { %18 = sbr.rel (!%p16_p5) target bundleno = 3 (0x3), region = 78 }

</bundles_post_ra>
